<compile_context>
chip_gen: v5e
topology: v5e:2x2
jax: 0.10.0
libtpu: 0.0.40
codegen_flags: <defaults>
</compile_context>

<pallas_src>
import jax
import jax.numpy as jnp
from jax.experimental import pallas as pl
from jax.experimental.pallas import tpu as pltpu

_LANE = 128
_SUBLANE = 8
_MAX_TILE_B = 2048  # caps per-step VMEM; re-derive if hid_p/out widths grow (v7x has 64 MiB)


def _round_up(n, m):
    return ((n + m - 1) // m) * m


def mlp_kernel(x_ref, w1_ref, b1_ref, w2_ref, b2_ref, w3_ref, b3_ref, out_ref):
    # Layer 1: Linear + ReLU   (x tile: (TILE_B, in_sz), w1: (in_sz, hid_p))
    h = jnp.dot(x_ref[...], w1_ref[...], preferred_element_type=jnp.float32)
    h = jnp.maximum(h + b1_ref[...], 0.0)          # (1, hid_p) bias -> sublane bcast
    # Layer 2: Linear + ReLU   (hid_p x hid_p, fully lane-dense)
    h = jnp.dot(h, w2_ref[...], preferred_element_type=jnp.float32)
    h = jnp.maximum(h + b2_ref[...], 0.0)
    # Layer 3: Linear (no activation); output width left unpadded (small masked
    # store hides under the much smaller output DMA).
    h = jnp.dot(h, w3_ref[...], preferred_element_type=jnp.float32) + b3_ref[...]
    out_ref[...] = h.astype(out_ref.dtype)


def pad_params(params):
    """One-time padding of weights/biases to lane-friendly hidden width.

    Zero-padding the hidden dim to a multiple of 128 is exact under ReLU:
    padded columns give relu(0*x + 0) = 0 and the matching padded rows of the
    next weight matrix are zero, so they contribute nothing downstream.
    The output width is NOT padded (saves 32x output HBM writeback).
    Call this once at init and reuse the result for every forward call.
    """
    w1, b1 = params["w1"], params["b1"]
    w2, b2 = params["w2"], params["b2"]
    w3, b3 = params["w3"], params["b3"]
    hid = w1.shape[1]
    hid_p = _round_up(hid, _LANE)
    return {
        "w1": jnp.pad(w1, ((0, 0), (0, hid_p - hid))),
        "b1": jnp.pad(b1, ((0, 0), (0, hid_p - hid))),
        "w2": jnp.pad(w2, ((0, hid_p - hid), (0, hid_p - hid))),
        "b2": jnp.pad(b2, ((0, 0), (0, hid_p - hid))),
        "w3": jnp.pad(w3, ((0, hid_p - hid), (0, 0))),
        "b3": b3,
    }


def _is_multicore_tpu():
    # v7x has 2 TensorCores per chip; v5e/v6e have 1 (grid is a serial loop).
    try:
        return "v7" in jax.devices()[0].device_kind.lower()
    except Exception:  # e.g. CPU interpret mode
        return False


@jax.jit
def network2_forward(x, padded_params):
    """Network2 forward pass as a single batch-tiled Pallas kernel.

    x: (batch, input_sz) float32
    padded_params: output of pad_params() (pre-padded, cached across calls).
    """
    w1, b1 = padded_params["w1"], padded_params["b1"]
    w2, b2 = padded_params["w2"], padded_params["b2"]
    w3, b3 = padded_params["w3"], padded_params["b3"]

    batch, in_sz = x.shape
    hid_p = w1.shape[1]
    out_sz = w3.shape[1]

    # --- tile / grid selection (trace-time, per device generation) ----------
    batch_8 = _round_up(batch, _SUBLANE)
    if _is_multicore_tpu() and batch_8 >= 2 * _SUBLANE:
        # v7x: >= 2 tiles, shard the batch axis across the two TensorCores.
        tile_b = min(_MAX_TILE_B, _round_up((batch_8 + 1) // 2, _SUBLANE))
        semantics = (pltpu.CORE_PARALLEL,)
    else:
        # v5e/v6e: single serial TC -> one big tile avoids per-step overhead.
        tile_b = min(_MAX_TILE_B, batch_8)
        semantics = ("arbitrary",)
    batch_p = _round_up(batch_8, tile_b)
    grid = (batch_p // tile_b,)

    x_p = jnp.pad(x, ((0, batch_p - batch), (0, 0))) if batch_p != batch else x

    # Weights/biases: constant index_map -> resident in VMEM, DMA'd once.
    # (pipeline_mode=pl.Buffered(1) would shave the second buffer; negligible here.)
    const = lambda shape: pl.BlockSpec(shape, lambda i: (0, 0))

    flops = 2 * batch_p * (in_sz * hid_p + hid_p * hid_p + hid_p * out_sz)
    bytes_accessed = 4 * (
        batch_p * in_sz                       # x
        + in_sz * hid_p + hid_p               # w1, b1
        + hid_p * hid_p + hid_p               # w2, b2
        + hid_p * out_sz + out_sz             # w3, b3
        + batch_p * out_sz                    # out
    )
    cost = pl.CostEstimate(flops=flops, transcendentals=0,
                           bytes_accessed=bytes_accessed)

    out = pl.pallas_call(
        mlp_kernel,
        out_shape=jax.ShapeDtypeStruct((batch_p, out_sz), jnp.float32),
        grid=grid,
        in_specs=[
            pl.BlockSpec((tile_b, in_sz), lambda i: (i, 0)),   # streamed x tiles
            const((in_sz, hid_p)), const((1, hid_p)),          # layer1 W, b
            const((hid_p, hid_p)), const((1, hid_p)),          # layer2 W, b
            const((hid_p, out_sz)), const((1, out_sz)),        # layer3 W, b
        ],
        out_specs=pl.BlockSpec((tile_b, out_sz), lambda i: (i, 0)),
        compiler_params=pltpu.CompilerParams(dimension_semantics=semantics),
        cost_estimate=cost,
    )(x_p, w1, b1, w2, b2, w3, b3)

    if batch_p != batch:
        out = out[:batch]
    return out


def init_params(key, input_sz, output_sz, hidden_sz=12):
    """Mimics PyTorch nn.Linear default init: U(-1/sqrt(fan_in), 1/sqrt(fan_in))."""
    ks = jax.random.split(key, 6)

    def linear(kw, kb, fan_in, fan_out):
        bound = 1.0 / jnp.sqrt(fan_in)
        w = jax.random.uniform(kw, (fan_in, fan_out), jnp.float32, -bound, bound)
        b = jax.random.uniform(kb, (1, fan_out), jnp.float32, -bound, bound)
        return w, b

    w1, b1 = linear(ks[0], ks[1], input_sz, hidden_sz)
    w2, b2 = linear(ks[2], ks[3], hidden_sz, hidden_sz)
    w3, b3 = linear(ks[4], ks[5], hidden_sz, output_sz)
    return {"w1": w1, "b1": b1, "w2": w2, "b2": b2, "w3": w3, "b3": b3}


def reference_forward(x, p):
    h = jnp.maximum(x @ p["w1"] + p["b1"], 0.0)
    h = jnp.maximum(h @ p["w2"] + p["b2"], 0.0)
    return h @ p["w3"] + p["b3"]


if __name__ == "__main__":
    # DQN-style problem: state dim 8, 4 actions, hidden 12 (module default),
    # a small replay-buffer minibatch.
    batch, input_sz, output_sz, hidden_sz = 64, 8, 4, 12

    key = jax.random.PRNGKey(0)
    kx, kp = jax.random.split(key)
    x = jax.random.normal(kx, (batch, input_sz), jnp.float32)
    params = init_params(kp, input_sz, output_sz, hidden_sz)

    padded_params = pad_params(params)           # one-time, cached across calls
    out = network2_forward(x, padded_params)
    out = jax.block_until_ready(out)

    ref = reference_forward(x, params)
    assert out.shape == (batch, output_sz)
    assert jnp.allclose(out, ref, atol=1e-4, rtol=1e-4), float(
        jnp.max(jnp.abs(out - ref))
    )

    print("KERNEL_OK")
</pallas_src>

<mosaic_0001>
module attributes {stable_mosaic.version = 11 : i64} {
  func.func @mlp_kernel(%arg0: i32, %arg1: memref<64x8xf32, #tpu.memory_space<vmem>>, %arg2: memref<8x128xf32, #tpu.memory_space<vmem>>, %arg3: memref<1x128xf32, #tpu.memory_space<vmem>>, %arg4: memref<128x128xf32, #tpu.memory_space<vmem>>, %arg5: memref<1x128xf32, #tpu.memory_space<vmem>>, %arg6: memref<128x4xf32, #tpu.memory_space<vmem>>, %arg7: memref<1x4xf32, #tpu.memory_space<vmem>>, %arg8: memref<64x4xf32, #tpu.memory_space<vmem>>) attributes {dimension_semantics = [#tpu.dimension_semantics<arbitrary>], iteration_bounds = array<i64: 1>, scalar_prefetch = 0 : i64, scratch_operands = 0 : i64, tpu.core_type = #tpu.core_type<tc>, window_params = [{transform_indices = @transform_0, window_bounds = array<i64: 64, 8>}, {pipeline_mode = #tpu.pipeline_mode<synchronous>, transform_indices = @transform_1, window_bounds = array<i64: 8, 128>}, {pipeline_mode = #tpu.pipeline_mode<synchronous>, transform_indices = @transform_2, window_bounds = array<i64: 1, 128>}, {pipeline_mode = #tpu.pipeline_mode<synchronous>, transform_indices = @transform_3, window_bounds = array<i64: 128, 128>}, {pipeline_mode = #tpu.pipeline_mode<synchronous>, transform_indices = @transform_4, window_bounds = array<i64: 1, 128>}, {pipeline_mode = #tpu.pipeline_mode<synchronous>, transform_indices = @transform_5, window_bounds = array<i64: 128, 4>}, {pipeline_mode = #tpu.pipeline_mode<synchronous>, transform_indices = @transform_6, window_bounds = array<i64: 1, 4>}, {transform_indices = @transform_7, window_bounds = array<i64: 64, 4>}]} {
    %c0 = arith.constant 0 : index
    %c0_0 = arith.constant 0 : index
    %0 = vector.load %arg1[%c0, %c0_0] : memref<64x8xf32, #tpu.memory_space<vmem>>, vector<64x8xf32>
    %c0_1 = arith.constant 0 : index
    %c0_2 = arith.constant 0 : index
    %1 = vector.load %arg2[%c0_1, %c0_2] : memref<8x128xf32, #tpu.memory_space<vmem>>, vector<8x128xf32>
    %cst = arith.constant dense<0.000000e+00> : vector<64x128xf32>
    %2 = tpu.matmul %0, %1, %cst {dimension_numbers = #tpu.dot_dimension_numbers<[1], [0], [0], [1], [0, 0, 1, 1], [], []>} : vector<64x8xf32>, vector<8x128xf32>, vector<64x128xf32> -> vector<64x128xf32>
    %c0_3 = arith.constant 0 : index
    %c0_4 = arith.constant 0 : index
    %3 = vector.load %arg3[%c0_3, %c0_4] : memref<1x128xf32, #tpu.memory_space<vmem>>, vector<1x128xf32>
    %4 = vector.broadcast %3 : vector<1x128xf32> to vector<64x128xf32>
    %5 = arith.addf %2, %4 : vector<64x128xf32>
    %cst_5 = arith.constant 0.000000e+00 : f32
    %6 = vector.broadcast %cst_5 : f32 to vector<64x128xf32>
    %7 = arith.maximumf %5, %6 : vector<64x128xf32>
    %c0_6 = arith.constant 0 : index
    %c0_7 = arith.constant 0 : index
    %8 = vector.load %arg4[%c0_6, %c0_7] : memref<128x128xf32, #tpu.memory_space<vmem>>, vector<128x128xf32>
    %cst_8 = arith.constant dense<0.000000e+00> : vector<64x128xf32>
    %9 = tpu.matmul %7, %8, %cst_8 {dimension_numbers = #tpu.dot_dimension_numbers<[1], [0], [0], [1], [0, 0, 1, 1], [], []>} : vector<64x128xf32>, vector<128x128xf32>, vector<64x128xf32> -> vector<64x128xf32>
    %c0_9 = arith.constant 0 : index
    %c0_10 = arith.constant 0 : index
    %10 = vector.load %arg5[%c0_9, %c0_10] : memref<1x128xf32, #tpu.memory_space<vmem>>, vector<1x128xf32>
    %11 = vector.broadcast %10 : vector<1x128xf32> to vector<64x128xf32>
    %12 = arith.addf %9, %11 : vector<64x128xf32>
    %cst_11 = arith.constant 0.000000e+00 : f32
    %13 = vector.broadcast %cst_11 : f32 to vector<64x128xf32>
    %14 = arith.maximumf %12, %13 : vector<64x128xf32>
    %c0_12 = arith.constant 0 : index
    %c0_13 = arith.constant 0 : index
    %15 = vector.load %arg6[%c0_12, %c0_13] : memref<128x4xf32, #tpu.memory_space<vmem>>, vector<128x4xf32>
    %cst_14 = arith.constant dense<0.000000e+00> : vector<64x4xf32>
    %16 = tpu.matmul %14, %15, %cst_14 {dimension_numbers = #tpu.dot_dimension_numbers<[1], [0], [0], [1], [0, 0, 1, 1], [], []>} : vector<64x128xf32>, vector<128x4xf32>, vector<64x4xf32> -> vector<64x4xf32>
    %c0_15 = arith.constant 0 : index
    %c0_16 = arith.constant 0 : index
    %17 = vector.load %arg7[%c0_15, %c0_16] : memref<1x4xf32, #tpu.memory_space<vmem>>, vector<1x4xf32>
    %18 = vector.broadcast %17 : vector<1x4xf32> to vector<64x4xf32>
    %19 = arith.addf %16, %18 : vector<64x4xf32>
    %c0_17 = arith.constant 0 : index
    %c0_18 = arith.constant 0 : index
    %20 = vector.load %arg8[%c0_17, %c0_18] : memref<64x4xf32, #tpu.memory_space<vmem>>, vector<64x4xf32>
    tpu.vector_store %arg8[%c0_17, %c0_18], %19 {strides = array<i32>} : memref<64x4xf32, #tpu.memory_space<vmem>>, vector<64x4xf32>,
    return
  }
  func.func @transform_0(%arg0: i32) -> (i32, i32) {
    %c0_i32 = arith.constant 0 : i32
    %c0_i32_0 = arith.constant 0 : i32
    return %arg0, %c0_i32 : i32, i32
  }
  func.func @transform_1(%arg0: i32) -> (i32, i32) {
    %c0_i32 = arith.constant 0 : i32
    %c0_i32_0 = arith.constant 0 : i32
    %c0_i32_1 = arith.constant 0 : i32
    return %c0_i32, %c0_i32_0 : i32, i32
  }
  func.func @transform_2(%arg0: i32) -> (i32, i32) {
    %c0_i32 = arith.constant 0 : i32
    %c0_i32_0 = arith.constant 0 : i32
    %c0_i32_1 = arith.constant 0 : i32
    return %c0_i32, %c0_i32_0 : i32, i32
  }
  func.func @transform_3(%arg0: i32) -> (i32, i32) {
    %c0_i32 = arith.constant 0 : i32
    %c0_i32_0 = arith.constant 0 : i32
    %c0_i32_1 = arith.constant 0 : i32
    return %c0_i32, %c0_i32_0 : i32, i32
  }
  func.func @transform_4(%arg0: i32) -> (i32, i32) {
    %c0_i32 = arith.constant 0 : i32
    %c0_i32_0 = arith.constant 0 : i32
    %c0_i32_1 = arith.constant 0 : i32
    return %c0_i32, %c0_i32_0 : i32, i32
  }
  func.func @transform_5(%arg0: i32) -> (i32, i32) {
    %c0_i32 = arith.constant 0 : i32
    %c0_i32_0 = arith.constant 0 : i32
    %c0_i32_1 = arith.constant 0 : i32
    return %c0_i32, %c0_i32_0 : i32, i32
  }
  func.func @transform_6(%arg0: i32) -> (i32, i32) {
    %c0_i32 = arith.constant 0 : i32
    %c0_i32_0 = arith.constant 0 : i32
    %c0_i32_1 = arith.constant 0 : i32
    return %c0_i32, %c0_i32_0 : i32, i32
  }
  func.func @transform_7(%arg0: i32) -> (i32, i32) {
    %c0_i32 = arith.constant 0 : i32
    %c0_i32_0 = arith.constant 0 : i32
    return %arg0, %c0_i32 : i32, i32
  }
}

</mosaic_0001>

<bundles_post_ra>
// kernel: network2_forward.1
= control target key start
LH: loop header
LB: loop body
LE: loop exit
PB: predicated region body
PF: predicated region fallthrough
CT: control target
= control target key end

     0   :  { %vm39_vm0 = vcmask 64512   ;;  %vm243_vm1 = vcmask 31744   ;;  %s521_s1 = inlined_call_operand.vmem [shape: f32[8,128], index: 1, kind: input, shape index: {}]   ;;  %s522_s0 = inlined_call_operand.vmem [shape: f32[64,8], index: 0, kind: input, shape index: {}]   ;;  %s523_s2 = inlined_call_operand.vmem [shape: f32[1,128], index: 2, kind: input, shape index: {}]   ;;  %s524_s3 = inlined_call_operand.vmem [shape: f32[128,128], index: 3, kind: input, shape index: {}]   ;;  %s525_s4 = inlined_call_operand.vmem [shape: f32[1,128], index: 4, kind: input, shape index: {}]   ;;  %s526_s5 = inlined_call_operand.vmem [shape: f32[128,4], index: 5, kind: input, shape index: {}]   ;;  %s527_s6 = inlined_call_operand.vmem [shape: f32[1,4], index: 6, kind: input, shape index: {}]   ;;  %s528_s7 = inlined_call_operand.vmem [shape: f32[64,4], index: 7, kind: output, shape index: {}]  }
   0x1   :  { %v34_v0 = vld [vmem:[%s521_s1] sm:$0xff]  ;;  %v27_v2 = vld [vmem:[%s522_s0 + $0x8] sm:$0xff]  ;;  %v28_v3 = vld [vmem:[%s522_s0 + $0x10] sm:$0xff] }
   0x2   :  { %v26_v1 = vld [vmem:[%s522_s0] sm:$0xff]  ;;  %79 = vmatpush.msra.mxu0 %v34_v0  ;;  %v29_v4 = vld [vmem:[%s522_s0 + $0x18] sm:$0xff]  ;;  %v127_v6 = vld [vmem:[%s524_s3 + $0x70] sm:$0xff] }
   0x3   :  { %256 = vmatmul.msk.f32.vlgmr.msra.gmra.mxu0 %vm39_vm0, %v26_v1  ;;  %v128_v5 = vld [vmem:[%s524_s3 + $0x78] sm:$0xff]  ;;  %v126_v7 = vld [vmem:[%s524_s3 + $0x68] sm:$0xff]  ;;  %v125_v8 = vld [vmem:[%s524_s3 + $0x60] sm:$0xff] }
   0x4   :  { %133 = vmatpush.msra.mxu1 %v128_v5  ;;  %264 = vmatpush.msra.mxu3 %v128_v5  ;;  %v30_v9 = vld [vmem:[%s522_s0 + $0x20] sm:$0xff]  ;;  %v124_v10 = vld [vmem:[%s524_s3 + $0x58] sm:$0xff]  ;;  %v123_v11 = vld [vmem:[%s524_s3 + $0x50] sm:$0xff] }
   0x5   :  { %v122_v12 = vld [vmem:[%s524_s3 + $0x48] sm:$0xff]  ;;  %v121_v13 = vld [vmem:[%s524_s3 + $0x40] sm:$0xff]  ;;  %v120_v15 = vld [vmem:[%s524_s3 + $0x38] sm:$0xff] }
   0x6   :  { %134 = vmatpush.msra.mxu1 %v127_v6  ;;  %265 = vmatpush.msra.mxu3 %v127_v6  ;;  %v31_v14 = vld [vmem:[%s522_s0 + $0x28] sm:$0xff]  ;;  %v119_v16 = vld [vmem:[%s524_s3 + $0x30] sm:$0xff]  ;;  %v117_v18 = vld [vmem:[%s524_s3 + $0x20] sm:$0xff] }
   0x7   :  { %v118_v17 = vld [vmem:[%s524_s3 + $0x28] sm:$0xff]  ;;  %v32_v19 = vld [vmem:[%s522_s0 + $0x30] sm:$0xff]  ;;  %v116_v20 = vld [vmem:[%s524_s3 + $0x18] sm:$0xff] }
   0x8   :  { %135 = vmatpush.msra.mxu1 %v126_v7  ;;  %266 = vmatpush.msra.mxu3 %v126_v7  ;;  %v33_v21 = vld [vmem:[%s522_s0 + $0x38] sm:$0xff]  ;;  %v115_v22 = vld [vmem:[%s524_s3 + $0x10] sm:$0xff]  ;;  %v114_v23 = vld [vmem:[%s524_s3 + $0x8] sm:$0xff] }
   0x9   :  { %v113_v24 = vld [vmem:[%s524_s3] sm:$0xff]  ;;  %v197_v38 = vld [vmem:[%s526_s5 + $0x78] sm:$0xff]  ;;  %v196_v39 = vld [vmem:[%s526_s5 + $0x70] sm:$0xff] }
   0xa   :  { %136 = vmatpush.msra.mxu1 %v125_v8  ;;  %267 = vmatpush.msra.mxu3 %v125_v8  ;;  %v425_v25 = vld [vmem:[%s523_s2] ss:$0 sm:$0xff]  ;;  %v195_v40 = vld [vmem:[%s526_s5 + $0x68] sm:$0xff]  ;;  %v193_v45 = vld [vmem:[%s526_s5 + $0x58] sm:$0xff] }
   0xb   :  { %257 = vmatmul.msk.f32.gmra.mxu0 %vm39_vm0, %v27_v2  ;;  %202 = vmatpush.msra.mxu2 %v197_v38  ;;  %v194_v43 = vld [vmem:[%s526_s5 + $0x60] sm:$0xff]  ;;  %v192_v46 = vld [vmem:[%s526_s5 + $0x50] sm:$0xff]  ;;  %v191_v47 = vld [vmem:[%s526_s5 + $0x48] sm:$0xff] }
   0xc   :  { %137 = vmatpush.msra.mxu1 %v124_v10  ;;  %268 = vmatpush.msra.mxu3 %v124_v10  ;;  %v190_v50 = vld [vmem:[%s526_s5 + $0x40] sm:$0xff]  ;;  %v189_v52 = vld [vmem:[%s526_s5 + $0x38] sm:$0xff]  ;;  %v188_v53 = vld [vmem:[%s526_s5 + $0x30] sm:$0xff] }
   0xd   :  { %203 = vmatpush.msra.mxu2 %v196_v39  ;;  %v187_v54 = vld [vmem:[%s526_s5 + $0x28] sm:$0xff]  ;;  %v186_v57 = vld [vmem:[%s526_s5 + $0x20] sm:$0xff]  ;;  %v185_v59 = vld [vmem:[%s526_s5 + $0x18] sm:$0xff] }
   0xe   :  { %138 = vmatpush.msra.mxu1 %v123_v11  ;;  %269 = vmatpush.msra.mxu3 %v123_v11  ;;  %v184_v63 = vld [vmem:[%s526_s5 + $0x10] sm:$0xff]  ;;  %v183_v0 = vld [vmem:[%s526_s5 + $0x8] sm:$0xff]  ;;  %v182_v1 = vld [vmem:[%s526_s5] sm:$0xff] }
   0xf   :  { %204 = vmatpush.msra.mxu2 %v195_v40  ;;  %v297_v2 = vld [vmem:[%s525_s4] ss:$0 sm:$0xff] }
  0x10   :  { %139 = vmatpush.msra.mxu1 %v122_v12  ;;  %270 = vmatpush.msra.mxu3 %v122_v12 }
  0x11   :  { %205 = vmatpush.msra.mxu2 %v194_v43 }
  0x12   :  { %140 = vmatpush.msra.mxu1 %v121_v13  ;;  %271 = vmatpush.msra.mxu3 %v121_v13 }
  0x13   :  { %258 = vmatmul.msk.f32.gmra.mxu0 %vm39_vm0, %v28_v3  ;;  %206 = vmatpush.msra.mxu2 %v193_v45 }
  0x14   :  { %141 = vmatpush.msra.mxu1 %v120_v15  ;;  %272 = vmatpush.msra.mxu3 %v120_v15 }
  0x15   :  { %207 = vmatpush.msra.mxu2 %v192_v46 }
  0x16   :  { %142 = vmatpush.msra.mxu1 %v119_v16  ;;  %273 = vmatpush.msra.mxu3 %v119_v16 }
  0x17   :  { %208 = vmatpush.msra.mxu2 %v191_v47 }
  0x18   :  { %143 = vmatpush.msra.mxu1 %v118_v17  ;;  %274 = vmatpush.msra.mxu3 %v118_v17 }
  0x19   :  { %209 = vmatpush.msra.mxu2 %v190_v50 }
  0x1a   :  { %144 = vmatpush.msra.mxu1 %v117_v18  ;;  %275 = vmatpush.msra.mxu3 %v117_v18 }
  0x1b   :  { %259 = vmatmul.msk.f32.gmra.mxu0 %vm39_vm0, %v29_v4  ;;  %210 = vmatpush.msra.mxu2 %v189_v52 }
  0x1c   :  { %145 = vmatpush.msra.mxu1 %v116_v20  ;;  %276 = vmatpush.msra.mxu3 %v116_v20 }
  0x1d   :  { %211 = vmatpush.msra.mxu2 %v188_v53 }
  0x1e   :  { %146 = vmatpush.msra.mxu1 %v115_v22  ;;  %277 = vmatpush.msra.mxu3 %v115_v22 }
  0x1f   :  { %212 = vmatpush.msra.mxu2 %v187_v54 }
  0x20   :  { %147 = vmatpush.msra.mxu1 %v114_v23  ;;  %278 = vmatpush.msra.mxu3 %v114_v23 }
  0x21   :  { %213 = vmatpush.msra.mxu2 %v186_v57 }
  0x22   :  { %148 = vmatpush.msra.mxu1 %v113_v24  ;;  %279 = vmatpush.msra.mxu3 %v113_v24 }
  0x23   :  { %260 = vmatmul.msk.f32.gmra.mxu0 %vm39_vm0, %v30_v9  ;;  %214 = vmatpush.msra.mxu2 %v185_v59 }
  0x24   :  { %280 = vmatpush.msrb.mxu3 %v197_v38 }
  0x25   :  { %215 = vmatpush.msra.mxu2 %v184_v63 }
  0x26   :  { %281 = vmatpush.msrb.mxu3 %v196_v39 }
  0x27   :  { %216 = vmatpush.msra.mxu2 %v183_v0 }
  0x28   :  { %282 = vmatpush.msrb.mxu3 %v195_v40 }
  0x29   :  { %217 = vmatpush.msra.mxu2 %v182_v1 }
  0x2a   :  { %283 = vmatpush.msrb.mxu3 %v194_v43 }
  0x2b   :  { %261 = vmatmul.msk.f32.gmra.mxu0 %vm39_vm0, %v31_v14 }
  0x2c   :  { %284 = vmatpush.msrb.mxu3 %v193_v45 }
  0x2e   :  { %285 = vmatpush.msrb.mxu3 %v192_v46 }
  0x30   :  { %286 = vmatpush.msrb.mxu3 %v191_v47 }
  0x32   :  { %287 = vmatpush.msrb.mxu3 %v190_v50 }
  0x33   :  { %262 = vmatmul.msk.f32.gmra.mxu0 %vm39_vm0, %v32_v19 }
  0x34   :  { %288 = vmatpush.msrb.mxu3 %v189_v52 }
  0x36   :  { %289 = vmatpush.msrb.mxu3 %v188_v53 }
  0x38   :  { %290 = vmatpush.msrb.mxu3 %v187_v54 }
  0x3a   :  { %291 = vmatpush.msrb.mxu3 %v186_v57 }
  0x3b   :  { %263 = vmatmul.msk.f32.gmra.mxu0 %vm39_vm0, %v33_v21 }
  0x3c   :  { %292 = vmatpush.msrb.mxu3 %v185_v59 }
  0x3e   :  { %293 = vmatpush.msrb.mxu3 %v184_v63 }
  0x40   :  { %294 = vmatpush.msrb.mxu3 %v183_v0 }
  0x42   :  { %295 = vmatpush.msrb.mxu3 %v182_v1 }
  0x80   :  { %v81_v26 = vpop.f32.mrf.mxu0 }
  0x81   :  { %v82_v27 = vadd.f32 %v425_v25, %v81_v26 }
  0x83   :  { %v105_v28 = vmax.f32 %v82_v27, 0.0  ;;  %v298_v27 = vld [vmem:[%s527_s6] ss:$0 sm:$0xff] }
  0x85   :  { %149 = vmatmul.f32.vlgmr.msra.gmra.mxu1 %v105_v28 }
  0x88   :  { %v84_v29 = vpop.f32.mrf.mxu0 }
  0x89   :  { %v85_v30 = vadd.f32 %v425_v25, %v84_v29 }
  0x8b   :  { %v106_v31 = vmax.f32 %v85_v30, 0.0 }
  0x8d   :  { %152 = vmatmul.f32.gmra.mxu1 %v106_v31 }
  0x90   :  { %v87_v32 = vpop.f32.mrf.mxu0 }
  0x91   :  { %v88_v33 = vadd.f32 %v425_v25, %v87_v32 }
  0x93   :  { %v107_v34 = vmax.f32 %v88_v33, 0.0 }
  0x95   :  { %155 = vmatmul.f32.gmra.mxu1 %v107_v34 }
  0x98   :  { %v90_v35 = vpop.f32.mrf.mxu0 }
  0x99   :  { %v91_v36 = vadd.f32 %v425_v25, %v90_v35 }
  0x9b   :  { %v108_v37 = vmax.f32 %v91_v36, 0.0 }
  0x9d   :  { %158 = vmatmul.f32.gmra.mxu1 %v108_v37 }
  0xa0   :  { %v93_v41 = vpop.f32.mrf.mxu0 }
  0xa1   :  { %v94_v42 = vadd.f32 %v425_v25, %v93_v41 }
  0xa3   :  { %v109_v44 = vmax.f32 %v94_v42, 0.0 }
  0xa5   :  { %161 = vmatmul.f32.gmra.mxu1 %v109_v44 }
  0xa8   :  { %v96_v48 = vpop.f32.mrf.mxu0 }
  0xa9   :  { %v97_v49 = vadd.f32 %v425_v25, %v96_v48 }
  0xab   :  { %v110_v51 = vmax.f32 %v97_v49, 0.0 }
  0xad   :  { %164 = vmatmul.f32.vlgmr.msra.gmra.mxu3 %v110_v51 }
  0xb0   :  { %v99_v55 = vpop.f32.mrf.mxu0 }
  0xb1   :  { %v100_v56 = vadd.f32 %v425_v25, %v99_v55 }
  0xb3   :  { %v111_v58 = vmax.f32 %v100_v56, 0.0 }
  0xb5   :  { %167 = vmatmul.f32.gmra.mxu3 %v111_v58 }
  0xb8   :  { %v102_v60 = vpop.f32.mrf.mxu0 }
  0xb9   :  { %v103_v61 = vadd.f32 %v425_v25, %v102_v60 }
  0xbb   :  { %v112_v62 = vmax.f32 %v103_v61, 0.0 }
  0xbd   :  { %170 = vmatmul.f32.gmra.mxu3 %v112_v62 }
 0x102   :  { %v150_v3 = vpop.f32.mrf.mxu1 }
 0x103   :  { %v151_v4 = vadd.f32 %v297_v2, %v150_v3 }
 0x105   :  { %v174_v5 = vmax.f32 %v151_v4, 0.0 }
 0x107   :  { %218 = vmatmul.f32.vlgmr.msra.gmra.mxu2 %v174_v5 }
 0x10a   :  { %v153_v6 = vpop.f32.mrf.mxu1 }
 0x10b   :  { %v154_v7 = vadd.f32 %v297_v2, %v153_v6 }
 0x10d   :  { %v175_v8 = vmax.f32 %v154_v7, 0.0 }
 0x10f   :  { %221 = vmatmul.f32.gmra.mxu2 %v175_v8 }
 0x112   :  { %v156_v9 = vpop.f32.mrf.mxu1 }
 0x113   :  { %v157_v10 = vadd.f32 %v297_v2, %v156_v9 }
 0x115   :  { %v176_v11 = vmax.f32 %v157_v10, 0.0 }
 0x117   :  { %224 = vmatmul.f32.gmra.mxu2 %v176_v11 }
 0x11a   :  { %v159_v12 = vpop.f32.mrf.mxu1 }
 0x11b   :  { %v160_v13 = vadd.f32 %v297_v2, %v159_v12 }
 0x11d   :  { %v177_v14 = vmax.f32 %v160_v13, 0.0 }
 0x11f   :  { %227 = vmatmul.f32.gmra.mxu2 %v177_v14 }
 0x122   :  { %v162_v15 = vpop.f32.mrf.mxu1 }
 0x123   :  { %v163_v16 = vadd.f32 %v297_v2, %v162_v15 }
 0x125   :  { %v178_v17 = vmax.f32 %v163_v16, 0.0 }
 0x127   :  { %230 = vmatmul.f32.gmra.mxu2 %v178_v17 }
 0x130   :  { %v165_v18 = vpop.f32.mrf.mxu3 }
 0x131   :  { %v166_v19 = vadd.f32 %v297_v2, %v165_v18 }
 0x133   :  { %v179_v20 = vmax.f32 %v166_v19, 0.0 }
 0x135   :  { %233 = vmatmul.f32.gmra.mxu2 %v179_v20 }
 0x138   :  { %v168_v21 = vpop.f32.mrf.mxu3 }
 0x139   :  { %v169_v22 = vadd.f32 %v297_v2, %v168_v21 }
 0x13b   :  { %v180_v23 = vmax.f32 %v169_v22, 0.0 }
 0x13d   :  { %236 = vmatmul.f32.vlgmr.msrb.gmra.mxu3 %v180_v23 }
 0x140   :  { %v171_v24 = vpop.f32.mrf.mxu3 }
 0x141   :  { %v172_v25 = vadd.f32 %v297_v2, %v171_v24 }
 0x143   :  { %v181_v26 = vmax.f32 %v172_v25, 0.0 }
 0x145   :  { %239 = vmatmul.f32.gmra.mxu3 %v181_v26 }
 0x18a   :  { %v219_v28 = vpop.f32.mrf.mxu2 }
 0x18b   :  { %v220_v29 = vadd.f32 %v298_v27, %v219_v28 }
 0x18d   :  { %244 = vst.msk [vmem:[%s528_s7] sm:$0xff] %vm243_vm1, %v220_v29 }
 0x192   :  { %v222_v30 = vpop.f32.mrf.mxu2 }
 0x193   :  { %v223_v31 = vadd.f32 %v298_v27, %v222_v30 }
 0x195   :  { %245 = vst.msk [vmem:[%s528_s7 + $0x8] sm:$0xff] %vm243_vm1, %v223_v31 }
 0x19a   :  { %v225_v32 = vpop.f32.mrf.mxu2 }
 0x19b   :  { %v226_v33 = vadd.f32 %v298_v27, %v225_v32 }
 0x19d   :  { %246 = vst.msk [vmem:[%s528_s7 + $0x10] sm:$0xff] %vm243_vm1, %v226_v33 }
 0x1a2   :  { %v228_v34 = vpop.f32.mrf.mxu2 }
 0x1a3   :  { %v229_v35 = vadd.f32 %v298_v27, %v228_v34 }
 0x1a5   :  { %247 = vst.msk [vmem:[%s528_s7 + $0x18] sm:$0xff] %vm243_vm1, %v229_v35 }
 0x1aa   :  { %v231_v36 = vpop.f32.mrf.mxu2 }
 0x1ab   :  { %v232_v37 = vadd.f32 %v298_v27, %v231_v36 }
 0x1ad   :  { %248 = vst.msk [vmem:[%s528_s7 + $0x20] sm:$0xff] %vm243_vm1, %v232_v37 }
 0x1b8   :  { %v234_v38 = vpop.f32.mrf.mxu2 }
 0x1b9   :  { %v235_v39 = vadd.f32 %v298_v27, %v234_v38 }
 0x1bb   :  { %249 = vst.msk [vmem:[%s528_s7 + $0x28] sm:$0xff] %vm243_vm1, %v235_v39 }
 0x1c0   :  { %v237_v40 = vpop.f32.mrf.mxu3 }
 0x1c1   :  { %v238_v41 = vadd.f32 %v298_v27, %v237_v40 }
 0x1c3   :  { %250 = vst.msk [vmem:[%s528_s7 + $0x30] sm:$0xff] %vm243_vm1, %v238_v41 }
 0x1c8   :  { %v240_v42 = vpop.f32.mrf.mxu3 }
 0x1c9   :  { %v241_v43 = vadd.f32 %v298_v27, %v240_v42 }
 0x1cb   :  { %251 = vst.msk [vmem:[%s528_s7 + $0x38] sm:$0xff] %vm243_vm1, %v241_v43 }

</bundles_post_ra>
